<compile_context>
chip_gen: v7x
topology: tpu7x:2x2x1
jax: 0.10.0
libtpu: 0.0.40
codegen_flags: <defaults>
</compile_context>

<pallas_src>
import jax
import jax.numpy as jnp
from jax.experimental import pallas as pl
from jax.experimental.pallas import tpu as pltpu


def _round_up(x, m):
    return (x + m - 1) // m * m


def _choose_tiles(n):
    """Return (tm, tk): adj row-tile / neighbor-column-tile.
    tm % 8 == 0, tk % 128 == 0 so adj blocks are sublane/lane aligned."""
    if n >= 2048:
        return 512, 1024
    if n >= 1024:
        return 256, 1024          # >= 2 row blocks so v7x megacore uses both TCs
    if n >= 512:
        return 256, _round_up(n, 128)
    return _round_up(min(n, 128), 8), _round_up(n, 128)


_VMEM_LIMIT = 32 * 1024 * 1024          # scoped VMEM limit; safe on v7x (64 MiB)
_FTS_RESIDENT_BYTES = 16 * 1024 * 1024  # budget for the (double-buffered) resident fts


def _make_linear_kernel(n, tm, mask_rows):
    """seq_fts = seq @ W (bf16 out).  Rows >= n are forced to exactly zero so
    the tk-aligned padded fts rows that stage 2 reads are well defined."""

    def kernel(seq_ref, w_ref, fts_ref):
        seq = seq_ref[...]
        if mask_rows:
            row = jax.lax.broadcasted_iota(jnp.int32, seq.shape, 0)
            seq = jnp.where(row < n - pl.program_id(0) * tm, seq, 0.0)
        fts_ref[...] = jnp.dot(
            seq.astype(jnp.bfloat16), w_ref[...],
            preferred_element_type=jnp.float32,
        ).astype(fts_ref.dtype)

    return kernel


def _make_aggregate_kernel(n, tk, resident_fts, ragged_k):
    """out = PReLU(adj @ seq_fts + bias), accumulated directly into out_ref."""

    def kernel(adj_ref, fts_ref, b_ref, alpha_ref, out_ref):
        k = pl.program_id(1)

        @pl.when(k == 0)
        def _():
            out_ref[...] = jnp.zeros_like(out_ref)

        adj = adj_ref[...]
        if ragged_k:
            # Tail neighbor block: columns past the real N hold whatever Pallas
            # left in the pad region -- replace them with zeros before the dot.
            col = jax.lax.broadcasted_iota(jnp.int32, adj.shape, 1)
            adj = jnp.where(col < n - k * tk, adj, 0.0)
        adj = adj.astype(jnp.bfloat16)          # cast in VMEM, MXU-native rate

        if resident_fts:
            off = pl.multiple_of(k * tk, tk)
            fts = fts_ref[pl.ds(off, tk), :]
        else:
            fts = fts_ref[...]

        out_ref[...] += jnp.dot(adj, fts, preferred_element_type=jnp.float32)

        @pl.when(k == pl.num_programs(1) - 1)
        def _():
            res = out_ref[...] + b_ref[...]
            alpha = alpha_ref[0]
            out_ref[...] = jnp.where(res > 0, res, alpha * res)

    return kernel


@jax.jit
def gcn_forward(seq, adj, w_t, bias, alpha):
    """seq: [N, in_ft] f32, adj: [N, N] f32 (dense stand-in for the sparse
    adjacency), w_t: [in_ft, out_ft] f32 (Linear weight pre-transposed),
    bias: [out_ft] f32, alpha: [1] f32 (PReLU).  Returns [N, out_ft] f32."""
    n, f_in = seq.shape
    f_out = w_t.shape[1]

    tm, tk = _choose_tiles(n)
    f_out_p = _round_up(f_out, 128)         # lane-dense outputs
    n_fts = _round_up(n, tk)                # fts rows padded to a tk multiple

    # Only tiny parameters are padded/cast host-side; the N x N adjacency and
    # the N x in_ft features are consumed in place (no extra HBM pass).
    w_p = jnp.pad(w_t.astype(jnp.bfloat16), ((0, 0), (0, f_out_p - f_out)))
    b_p = jnp.pad(bias.astype(jnp.float32),
                  (0, f_out_p - f_out)).reshape(1, f_out_p)
    alpha = alpha.astype(jnp.float32).reshape(1)

    # ---- Stage 1: seq_fts = seq @ W^T, rows zero-padded up to n_fts. ----
    tm1 = min(512, n_fts)
    seq_last_blk = (n - 1) // tm1           # never DMA a fully-OOB seq block
    seq_fts = pl.pallas_call(
        _make_linear_kernel(n, tm1, mask_rows=n_fts > n),
        out_shape=jax.ShapeDtypeStruct((n_fts, f_out_p), jnp.bfloat16),
        grid=(pl.cdiv(n_fts, tm1),),
        in_specs=[
            pl.BlockSpec((tm1, f_in), lambda i: (jnp.minimum(i, seq_last_blk), 0)),
            pl.BlockSpec((f_in, f_out_p), lambda i: (0, 0)),
        ],
        out_specs=pl.BlockSpec((tm1, f_out_p), lambda i: (i, 0)),
        compiler_params=pltpu.CompilerParams(
            dimension_semantics=("parallel",),
            vmem_limit_bytes=_VMEM_LIMIT),
    )(seq, w_p)

    # ---- Stage 2: out = PReLU(adj @ seq_fts + bias). ----
    # Keep the whole fts matrix VMEM-resident across the grid when it fits
    # (block index (0,0) every step -> fetched once); otherwise stream tk rows.
    resident = 2 * n_fts * f_out_p * 2 <= _FTS_RESIDENT_BYTES
    if resident:
        fts_spec = pl.BlockSpec((n_fts, f_out_p), lambda i, k: (0, 0))
    else:
        fts_spec = pl.BlockSpec((tk, f_out_p), lambda i, k: (k, 0))

    out_p = pl.pallas_call(
        _make_aggregate_kernel(n, tk, resident, ragged_k=(n % tk != 0)),
        out_shape=jax.ShapeDtypeStruct((n, f_out_p), jnp.float32),
        grid_spec=pltpu.PrefetchScalarGridSpec(
            num_scalar_prefetch=0,
            grid=(pl.cdiv(n, tm), pl.cdiv(n, tk)),
            in_specs=[
                # TODO(synk): add pipeline_mode=pl.Buffered(3) here if profiling
                # shows exposed DMA on the adjacency stream.
                pl.BlockSpec((tm, tk), lambda i, k: (i, k)),
                fts_spec,
                pl.BlockSpec((1, f_out_p), lambda i, k: (0, 0)),
                pl.BlockSpec(memory_space=pltpu.MemorySpace.SMEM),
            ],
            out_specs=pl.BlockSpec((tm, f_out_p), lambda i, k: (i, 0)),
        ),
        compiler_params=pltpu.CompilerParams(
            dimension_semantics=("parallel", "arbitrary"),
            vmem_limit_bytes=_VMEM_LIMIT),
    )(adj, seq_fts, b_p, alpha)

    return out_p[:, :f_out]


def gcn_ref(seq, adj, w_t, bias, alpha):
    """Reference applying the same bf16 input/intermediate rounding as the
    kernel (f32 accumulation), so comparison tolerances stay tight."""
    seq_b = seq.astype(jnp.bfloat16).astype(jnp.float32)
    w_b = w_t.astype(jnp.bfloat16).astype(jnp.float32)
    fts = (seq_b @ w_b).astype(jnp.bfloat16).astype(jnp.float32)
    adj_b = adj.astype(jnp.bfloat16).astype(jnp.float32)
    out = adj_b @ fts + bias
    return jnp.where(out > 0, out, alpha[0] * out)


if __name__ == "__main__":
    def run_case(n, in_ft, out_ft):
        key = jax.random.PRNGKey(0)
        k_seq, k_adj, k_w = jax.random.split(key, 3)

        seq = jax.random.normal(k_seq, (n, in_ft), dtype=jnp.float32)
        # Row-normalized random adjacency (dense stand-in for the sparse adj).
        adj_raw = jax.random.uniform(k_adj, (n, n), dtype=jnp.float32)
        adj = adj_raw / jnp.sum(adj_raw, axis=1, keepdims=True)

        # Parameters matching the module __init__:
        #   nn.Linear(in_ft, out_ft, bias=False), xavier_normal_(gain=1.414),
        #   bias filled 0.0, PReLU alpha = 0.25.
        gain = 1.414
        std = gain * (2.0 / (in_ft + out_ft)) ** 0.5
        w = std * jax.random.normal(k_w, (out_ft, in_ft), dtype=jnp.float32)
        w_t = w.T
        bias = jnp.zeros((out_ft,), dtype=jnp.float32)
        alpha = jnp.array([0.25], dtype=jnp.float32)

        out = gcn_forward(seq, adj, w_t, bias, alpha)
        jax.block_until_ready(out)

        ref = gcn_ref(seq, adj, w_t, bias, alpha)
        assert out.shape == (n, out_ft), out.shape
        max_err = float(jnp.max(jnp.abs(out - ref)))
        assert jnp.allclose(out, ref, atol=2e-3, rtol=2e-3), (n, max_err)

    # Small shape consistent with the module.
    run_case(16, 32, 32)
    # Ragged N with multiple neighbor (k) blocks: exercises the tail-column
    # masking, direct-into-output accumulation and resident-fts slicing.
    run_case(1030, 32, 32)

    print("KERNEL_OK")
</pallas_src>

<mosaic_0001>
module attributes {stable_mosaic.version = 11 : i64} {
  func.func @kernel(%arg0: i32, %arg1: memref<128x32xf32, #tpu.memory_space<vmem>>, %arg2: memref<32x128xbf16, #tpu.memory_space<vmem>>, %arg3: memref<128x128xbf16, #tpu.memory_space<vmem>>) attributes {dimension_semantics = [#tpu.dimension_semantics<parallel>], iteration_bounds = array<i64: 1>, scalar_prefetch = 0 : i64, scratch_operands = 0 : i64, tpu.core_type = #tpu.core_type<tc>, window_params = [{transform_indices = @transform_0, window_bounds = array<i64: 128, 32>}, {pipeline_mode = #tpu.pipeline_mode<synchronous>, transform_indices = @transform_1, window_bounds = array<i64: 32, 128>}, {transform_indices = @transform_2, window_bounds = array<i64: 128, 128>}]} {
    %c0 = arith.constant 0 : index
    %c0_0 = arith.constant 0 : index
    %0 = vector.load %arg1[%c0, %c0_0] : memref<128x32xf32, #tpu.memory_space<vmem>>, vector<128x32xf32>
    %1 = tpu.iota {dimensions = array<i32: 0>} : vector<128x32xi32>
    %c128_i32 = arith.constant 128 : i32
    %2 = arith.muli %arg0, %c128_i32 : i32
    %c16_i32 = arith.constant 16 : i32
    %3 = arith.subi %c16_i32, %2 : i32
    %4 = vector.broadcast %3 : i32 to vector<128x32xi32>
    %5 = arith.cmpi slt, %1, %4 : vector<128x32xi32>
    %cst = arith.constant 0.000000e+00 : f32
    %6 = vector.broadcast %cst : f32 to vector<128x32xf32>
    %7 = arith.select %5, %0, %6 : vector<128x32xi1>, vector<128x32xf32>
    %8 = arith.truncf %7 : vector<128x32xf32> to vector<128x32xbf16>
    %c0_1 = arith.constant 0 : index
    %c0_2 = arith.constant 0 : index
    %9 = vector.load %arg2[%c0_1, %c0_2] : memref<32x128xbf16, #tpu.memory_space<vmem>>, vector<32x128xbf16>
    %cst_3 = arith.constant dense<0.000000e+00> : vector<128x128xf32>
    %10 = tpu.matmul %8, %9, %cst_3 {dimension_numbers = #tpu.dot_dimension_numbers<[1], [0], [0], [1], [0, 0, 1, 1], [], []>} : vector<128x32xbf16>, vector<32x128xbf16>, vector<128x128xf32> -> vector<128x128xf32>
    %11 = arith.truncf %10 : vector<128x128xf32> to vector<128x128xbf16>
    %c0_4 = arith.constant 0 : index
    %c0_5 = arith.constant 0 : index
    %12 = vector.load %arg3[%c0_4, %c0_5] : memref<128x128xbf16, #tpu.memory_space<vmem>>, vector<128x128xbf16>
    tpu.vector_store %arg3[%c0_4, %c0_5], %11 {strides = array<i32>} : memref<128x128xbf16, #tpu.memory_space<vmem>>, vector<128x128xbf16>,
    return
  }
  func.func @transform_0(%arg0: i32) -> (i32, i32) {
    %c0_i32 = arith.constant 0 : i32
    %0 = arith.minsi %arg0, %c0_i32 : i32
    %c0_i32_0 = arith.constant 0 : i32
    %c0_i32_1 = arith.constant 0 : i32
    return %0, %c0_i32_0 : i32, i32
  }
  func.func @transform_1(%arg0: i32) -> (i32, i32) {
    %c0_i32 = arith.constant 0 : i32
    %c0_i32_0 = arith.constant 0 : i32
    %c0_i32_1 = arith.constant 0 : i32
    return %c0_i32, %c0_i32_0 : i32, i32
  }
  func.func @transform_2(%arg0: i32) -> (i32, i32) {
    %c0_i32 = arith.constant 0 : i32
    %c0_i32_0 = arith.constant 0 : i32
    return %arg0, %c0_i32 : i32, i32
  }
}

module attributes {stable_mosaic.version = 11 : i64} {
  func.func @kernel(%arg0: i32, %arg1: i32, %arg2: memref<16x128xf32, #tpu.memory_space<vmem>>, %arg3: memref<128x128xbf16, #tpu.memory_space<vmem>>, %arg4: memref<1x128xf32, #tpu.memory_space<vmem>>, %arg5: memref<1xf32, #tpu.memory_space<smem>>, %arg6: memref<16x128xf32, #tpu.memory_space<vmem>>) attributes {dimension_semantics = [#tpu.dimension_semantics<parallel>, #tpu.dimension_semantics<arbitrary>], iteration_bounds = array<i64: 1, 1>, scalar_prefetch = 0 : i64, scratch_operands = 0 : i64, tpu.core_type = #tpu.core_type<tc>, window_params = [{transform_indices = @transform_0, window_bounds = array<i64: 16, 128>}, {pipeline_mode = #tpu.pipeline_mode<synchronous>, transform_indices = @transform_1, window_bounds = array<i64: 128, 128>}, {pipeline_mode = #tpu.pipeline_mode<synchronous>, transform_indices = @transform_2, window_bounds = array<i64: 1, 128>}, {transform_indices = @transform_3, window_bounds = array<i64: 1>}, {transform_indices = @transform_4, window_bounds = array<i64: 16, 128>}]} {
    %c0_i32 = arith.constant 0 : i32
    %0 = arith.cmpi eq, %arg1, %c0_i32 : i32
    %1 = arith.extui %0 : i1 to i32
    %c0_i32_0 = arith.constant 0 : i32
    %2 = arith.cmpi ne, %1, %c0_i32_0 : i32
    scf.if %2 {
      %cst_11 = arith.constant 0.000000e+00 : f32
      %23 = vector.broadcast %cst_11 : f32 to vector<16x128xf32>
      %c0_12 = arith.constant 0 : index
      %c0_13 = arith.constant 0 : index
      %24 = vector.load %arg6[%c0_12, %c0_13] : memref<16x128xf32, #tpu.memory_space<vmem>>, vector<16x128xf32>
      tpu.vector_store %arg6[%c0_12, %c0_13], %23 {strides = array<i32>} : memref<16x128xf32, #tpu.memory_space<vmem>>, vector<16x128xf32>,
    } else {
    }
    %c0 = arith.constant 0 : index
    %c0_1 = arith.constant 0 : index
    %3 = vector.load %arg2[%c0, %c0_1] : memref<16x128xf32, #tpu.memory_space<vmem>>, vector<16x128xf32>
    %4 = tpu.iota {dimensions = array<i32: 1>} : vector<16x128xi32>
    %c128_i32 = arith.constant 128 : i32
    %5 = arith.muli %arg1, %c128_i32 : i32
    %c16_i32 = arith.constant 16 : i32
    %6 = arith.subi %c16_i32, %5 : i32
    %7 = vector.broadcast %6 : i32 to vector<16x128xi32>
    %8 = arith.cmpi slt, %4, %7 : vector<16x128xi32>
    %cst = arith.constant 0.000000e+00 : f32
    %9 = vector.broadcast %cst : f32 to vector<16x128xf32>
    %10 = arith.select %8, %3, %9 : vector<16x128xi1>, vector<16x128xf32>
    %11 = arith.truncf %10 : vector<16x128xf32> to vector<16x128xbf16>
    %c128_i32_2 = arith.constant 128 : i32
    %12 = arith.muli %arg1, %c128_i32_2 : i32
    %13 = tpu.assume_multiple %12, 128 : i32
    %14 = arith.index_cast %13 : i32 to index
    %c0_3 = arith.constant 0 : index
    %15 = vector.load %arg3[%14, %c0_3] : memref<128x128xbf16, #tpu.memory_space<vmem>>, vector<128x128xbf16>
    %c0_4 = arith.constant 0 : index
    %c0_5 = arith.constant 0 : index
    %16 = vector.load %arg6[%c0_4, %c0_5] : memref<16x128xf32, #tpu.memory_space<vmem>>, vector<16x128xf32>
    %cst_6 = arith.constant dense<0.000000e+00> : vector<16x128xf32>
    %17 = tpu.matmul %11, %15, %cst_6 {dimension_numbers = #tpu.dot_dimension_numbers<[1], [0], [0], [1], [0, 0, 1, 1], [], []>} : vector<16x128xbf16>, vector<128x128xbf16>, vector<16x128xf32> -> vector<16x128xf32>
    %18 = arith.addf %16, %17 : vector<16x128xf32>
    %c0_7 = arith.constant 0 : index
    %c0_8 = arith.constant 0 : index
    %19 = vector.load %arg6[%c0_7, %c0_8] : memref<16x128xf32, #tpu.memory_space<vmem>>, vector<16x128xf32>
    tpu.vector_store %arg6[%c0_7, %c0_8], %18 {strides = array<i32>} : memref<16x128xf32, #tpu.memory_space<vmem>>, vector<16x128xf32>,
    %c0_i32_9 = arith.constant 0 : i32
    %20 = arith.cmpi eq, %arg1, %c0_i32_9 : i32
    %21 = arith.extui %20 : i1 to i32
    %c0_i32_10 = arith.constant 0 : i32
    %22 = arith.cmpi ne, %21, %c0_i32_10 : i32
    scf.if %22 {
      %c0_11 = arith.constant 0 : index
      %c0_12 = arith.constant 0 : index
      %23 = vector.load %arg6[%c0_11, %c0_12] : memref<16x128xf32, #tpu.memory_space<vmem>>, vector<16x128xf32>
      %c0_13 = arith.constant 0 : index
      %c0_14 = arith.constant 0 : index
      %24 = vector.load %arg4[%c0_13, %c0_14] : memref<1x128xf32, #tpu.memory_space<vmem>>, vector<1x128xf32>
      %25 = vector.broadcast %24 : vector<1x128xf32> to vector<16x128xf32>
      %26 = arith.addf %23, %25 : vector<16x128xf32>
      %c0_15 = arith.constant 0 : index
      %27 = memref.load %arg5[%c0_15] : memref<1xf32, #tpu.memory_space<smem>>
      %cst_16 = arith.constant 0.000000e+00 : f32
      %28 = vector.broadcast %cst_16 : f32 to vector<16x128xf32>
      %29 = arith.cmpf ogt, %26, %28 : vector<16x128xf32>
      %30 = vector.broadcast %27 : f32 to vector<16x128xf32>
      %31 = arith.mulf %30, %26 : vector<16x128xf32>
      %32 = arith.select %29, %26, %31 : vector<16x128xi1>, vector<16x128xf32>
      %c0_17 = arith.constant 0 : index
      %c0_18 = arith.constant 0 : index
      %33 = vector.load %arg6[%c0_17, %c0_18] : memref<16x128xf32, #tpu.memory_space<vmem>>, vector<16x128xf32>
      tpu.vector_store %arg6[%c0_17, %c0_18], %32 {strides = array<i32>} : memref<16x128xf32, #tpu.memory_space<vmem>>, vector<16x128xf32>,
    } else {
    }
    return
  }
  func.func @transform_0(%arg0: i32, %arg1: i32) -> (i32, i32) {
    %c0_i32 = arith.constant 0 : i32
    return %arg0, %arg1 : i32, i32
  }
  func.func @transform_1(%arg0: i32, %arg1: i32) -> (i32, i32) {
    %c0_i32 = arith.constant 0 : i32
    %c0_i32_0 = arith.constant 0 : i32
    %c0_i32_1 = arith.constant 0 : i32
    return %c0_i32, %c0_i32_0 : i32, i32
  }
  func.func @transform_2(%arg0: i32, %arg1: i32) -> (i32, i32) {
    %c0_i32 = arith.constant 0 : i32
    %c0_i32_0 = arith.constant 0 : i32
    %c0_i32_1 = arith.constant 0 : i32
    return %c0_i32, %c0_i32_0 : i32, i32
  }
  func.func @transform_3(%arg0: i32, %arg1: i32) -> i32 {
    %c0_i32 = arith.constant 0 : i32
    %c0_i32_0 = arith.constant 0 : i32
    return %c0_i32 : i32
  }
  func.func @transform_4(%arg0: i32, %arg1: i32) -> (i32, i32) {
    %c0_i32 = arith.constant 0 : i32
    %c0_i32_0 = arith.constant 0 : i32
    return %arg0, %c0_i32 : i32, i32
  }
}

</mosaic_0001>

<bundles_post_ra>
// kernel: gcn_forward.2
= control target key start
LH: loop header
LB: loop body
LE: loop exit
PB: predicated region body
PF: predicated region fallthrough
CT: control target
= control target key end

     0   :  { %v429_v1 = vmov 0.0|0.0   ;;  %vm104_vm0 = vcmask 261120   ;;  %s481_s1 = inlined_call_operand.vmem [shape: bf16[32,128], index: 1, kind: input, shape index: {}]   ;;  %s482_s0 = inlined_call_operand.vmem [shape: f32[16,32], index: 0, kind: input, shape index: {}]   ;;  %s483_s2 = inlined_call_operand.vmem [shape: bf16[128,128], index: 2, kind: output, shape index: {}]  }
   0x1   :  { %v427_v0 = vld [vmem:[%s481_s1] sm:$0xff]   ;;  %414 = vmatprep.mubr.bf16.mxu1 %v429_v1  ;;  %v428_v2 = vld [vmem:[%s481_s1 + $0x8] sm:$0xff]  }
   0x2   :  { %402 = vmatprep.subr.bf16.mxu0 %v427_v0  ;;  %422 = vmatprep.subr.bf16.mxu1 %v427_v0  ;;  %v12_v3 = vld [vmem:[%s482_s0] sm:$0xff]  ;;  %v13_v4 = vld [vmem:[%s482_s0 + $0x8] sm:$0xff] }
   0x3   :  { %403 = vmatpush3.bf16.msra.mxu0 %v427_v0  ;;  %424 = vmatpush3.bf16.msra.mxu1 %v427_v0  ;;  %v80_v5 = vpack.c.bf16 %v13_v4, %v12_v3 }
   0x4   :  { %404 = vmatprep.subr.bf16.mxu0 %v428_v2  ;;  %423 = vmatprep.subr.bf16.mxu1 %v428_v2 }
   0x5   :  { %406 = vmatprep.mubr.msk.bf16.mxu0 %vm104_vm0, %v80_v5 }
   0x7   :  { %405 = vmatpush3.bf16.msra.mxu0 %v428_v2  ;;  %425 = vmatpush3.bf16.msra.mxu1 %v428_v2 }
   0xa   :  { %407 = vmatmul.mubr.bf16.vlgmr.msra.gmra.mrb[0].mxu0 %v429_v1  ;;  %415 = vmatmul.mubr.bf16.vlgmr.msra.gmra.mrb[0].mxu1 %v429_v1 }
   0xb   :  { %410 = vmatprep.mubr.bf16.mxu0 %v429_v1  ;;  %418 = vmatprep.mubr.bf16.mxu1 %v429_v1 }
  0x12   :  { %411 = vmatmul.mubr.bf16.gmra.mrb[4].mxu0 %v429_v1  ;;  %419 = vmatmul.mubr.bf16.gmra.mrb[4].mxu1 %v429_v1 }
  0xdd   :  { %v408_v6 = vpop.f32.mrb[0].mxu0  ;;  %v416_v7 = vpop.f32.mrb[0].mxu1 }
  0xde   :  { %v163_v8 = vpop.f32.mrb[1].mxu0  ;;  %v195_v9 = vpop.f32.mrb[1].mxu1 }
  0xdf   :  { %v409_v10 = vpop.f32.mrb[2].mxu0  ;;  %v417_v11 = vpop.f32.mrb[2].mxu1 }
  0xe0   :  { %v353_v12 = vpack.c.bf16 %v409_v10, %v408_v6  ;;  %v373_v13 = vpack.c.bf16 %v417_v11, %v416_v7  ;;  %v166_v14 = vpop.f32.mrb[3].mxu0  ;;  %v198_v15 = vpop.f32.mrb[3].mxu1 }
  0xe1   :  { %v348_v16 = vpack.c.bf16 %v166_v14, %v163_v8  ;;  %v368_v17 = vpack.c.bf16 %v198_v15, %v195_v9 }
  0xe2   :  { %385 = vst [vmem:[%s483_s2 + $0x8] sm:$0xff] %v353_v12   ;;  %389 = vst [vmem:[%s483_s2 + $0x28] sm:$0xff] %v373_v13  }
  0xe3   :  { %349 = vst [vmem:[%s483_s2] sm:$0xff] %v348_v16   ;;  %388 = vst [vmem:[%s483_s2 + $0x20] sm:$0xff] %v368_v17  }
  0xe5   :  { %v412_v18 = vpop.f32.mrb[4].mxu0  ;;  %v420_v19 = vpop.f32.mrb[4].mxu1 }
  0xe6   :  { %v179_v20 = vpop.f32.mrb[5].mxu0  ;;  %v211_v21 = vpop.f32.mrb[5].mxu1 }
  0xe7   :  { %v413_v22 = vpop.f32.mrb[6].mxu0  ;;  %v421_v23 = vpop.f32.mrb[6].mxu1 }
  0xe8   :  { %v363_v24 = vpack.c.bf16 %v413_v22, %v412_v18  ;;  %v383_v25 = vpack.c.bf16 %v421_v23, %v420_v19  ;;  %v182_v26 = vpop.f32.mrb[7].mxu0  ;;  %v214_v27 = vpop.f32.mrb[7].mxu1 }
  0xe9   :  { %v358_v28 = vpack.c.bf16 %v182_v26, %v179_v20  ;;  %v378_v29 = vpack.c.bf16 %v214_v27, %v211_v21 }
  0xea   :  { %387 = vst [vmem:[%s483_s2 + $0x18] sm:$0xff] %v363_v24   ;;  %391 = vst [vmem:[%s483_s2 + $0x38] sm:$0xff] %v383_v25  }
  0xeb   :  { %386 = vst [vmem:[%s483_s2 + $0x10] sm:$0xff] %v358_v28   ;;  %390 = vst [vmem:[%s483_s2 + $0x30] sm:$0xff] %v378_v29  }

// kernel: gcn_forward.3
= control target key start
LH: loop header
LB: loop body
LE: loop exit
PB: predicated region body
PF: predicated region fallthrough
CT: control target
= control target key end

     0   :  { %v272_v1 = vmov 0.0   ;;  %vm273_vm0 = vmmov 0   ;;  %s350_s0 = inlined_call_operand.vmem [shape: f32[16,16], index: 0, kind: input, shape index: {}]   ;;  %s351_s1 = inlined_call_operand.vmem [shape: bf16[128,128], index: 1, kind: input, shape index: {}]   ;;  %s352_s2 = inlined_call_operand.vmem [shape: f32[1,128], index: 2, kind: input, shape index: {}]   ;;  %s353_s3 = inlined_call_operand.<no memory space> [shape: f32[1], index: 3, kind: input, shape index: {}]   ;;  %s354_s4 = inlined_call_operand.hbm [shape: f32[16,128], index: 4, kind: output, shape index: {}]  }
   0x1   :  { %v240_v0 = vld [vmem:[%s351_s1] sm:$0xff]   ;;  %215 = vmatprep.subr.bf16.mxu0 %v272_v1  ;;  %v241_v2 = vld [vmem:[%s351_s1 + $0x8] sm:$0xff]   ;;  %231 = vmatprep.mubr.msk.bf16.mxu0 %vm273_vm0, %v272_v1  ;;  %v242_v3 = vld [vmem:[%s351_s1 + $0x10] sm:$0xff]  }
   0x2   :  { %216 = vmatpush3.bf16.msra.mxu0 %v240_v0 }
   0x3   :  { %217 = vmatprep.subr.bf16.mxu0 %v272_v1 }
   0x6   :  { %218 = vmatpush3.bf16.msra.mxu0 %v241_v2 }
   0x7   :  { %219 = vmatprep.subr.bf16.mxu0 %v272_v1 }
   0x8   :  { %10 = vsyncpa [#allocation4], 0  ;;  %v243_v4 = vld [vmem:[%s351_s1 + $0x18] sm:$0xff]   ;;  %v244_v5 = vld [vmem:[%s351_s1 + $0x20] sm:$0xff]   ;;  %v28_v7 = vlaneseq  ;;  %v169_v17 = vstv %s353_s3 }
   0x9   :  { %v245_v6 = vld [vmem:[%s351_s1 + $0x28] sm:$0xff]   ;;  %v246_v8 = vld [vmem:[%s351_s1 + $0x30] sm:$0xff]   ;;  %v247_v10 = vld [vmem:[%s351_s1 + $0x38] sm:$0xff]  }
   0xa   :  { %220 = vmatpush3.bf16.msra.mxu0 %v242_v3  ;;  %v29_v9 = vand.u32 127, %v28_v7  ;;  %v26_v11 = vld [vmem:[%s350_s0] sm:$0xff]  ;;  %v27_v12 = vld [vmem:[%s350_s0 + $0x8] sm:$0xff]  ;;  %s274_s0 = smov [#allocation3]  }
   0xb   :  { %221 = vmatprep.subr.bf16.mxu0 %v272_v1  ;;  %v203_v13 = vpack.c.bf16 %v27_v12, %v26_v11  ;;  %v205_v15 = vld [vmem:[%s352_s2] ss:$0 sm:$0xff]  ;;  %s181_s12 = sshll.u32 %s274_s0, 4  ;;  %s182_s12 = int_to_ptr.vmem [resolvable:$true] %s181_s12 }
   0xc   :  { %vm33_vm1 = vcmp.lt.s32.totalorder %v29_v9, 16  ;;  %s248_s2 = scalar_lea.vmem %s182_s12, 256  ;;  %p253_p1 = scmp.lt.s32.totalorder %s182_s12, %s182_s12 }
   0xd   :  { %vm202_vm2 = vmpackc.low %vm33_vm1, %vm33_vm1  ;;  %p249_p0 = scmp.ne.s32.totalorder %s182_s12, %s248_s2  ;;  %p254_p2 = scmp.lt.s32.totalorder %s248_s2, %s248_s2 }
   0xe   :  { %222 = vmatpush3.bf16.msra.mxu0 %v243_v4 }
   0xf   :  { %223 = vmatprep.subr.bf16.mxu0 %v272_v1  ;;  %p255_p3 = por %p254_p2, %p253_p1 }
  0x11   :  { %p256_p4 = pnand %p255_p3, %p249_p0 }
  0x12   :  { %224 = vmatpush3.bf16.msra.mxu0 %v244_v5 }
  0x13   :  { %225 = vmatprep.subr.bf16.mxu0 %v272_v1 }
  0x16   :  { %226 = vmatpush3.bf16.msra.mxu0 %v245_v6 }
  0x17   :  { %227 = vmatprep.subr.bf16.mxu0 %v272_v1 }
  0x1a   :  { %228 = vmatpush3.bf16.msra.mxu0 %v246_v8 }
  0x1b   :  { %229 = vmatprep.subr.bf16.mxu0 %v272_v1 }
  0x1e   :  { %230 = vmatpush3.bf16.msra.mxu0 %v247_v10 }
  0x21   :  { %232 = vmatmul.mubr.msk.bf16.vlgmr.msra.gmra.mrb[0].mxu0 %vm202_vm2, %v203_v13 }
  0xf4   :  { %v141_v14 = vpop.f32.mrb[0].mxu0 }
  0xf5   :  { %v233_v16 = vpop.f32.mrb[1].mxu0  ;;  %v164_v19 = vadd.f32 %v205_v15, %v141_v14 }
  0xf6   :  { %v144_v18 = vpop.f32.mrb[2].mxu0 }
  0xf7   :  { %v234_v20 = vpop.f32.mrb[3].mxu0  ;;  %vm167_vm3 = vcmp.gt.f32.partialorder %v164_v19, 0.0  ;;  %v170_v21 = vmul.f32 %v169_v17, %v164_v19  ;;  %v165_v22 = vadd.f32 %v205_v15, %v144_v18 }
  0xf9   :  { %v172_v23 = vsel %vm167_vm3, %v164_v19, %v170_v21  ;;  %vm168_vm4 = vcmp.gt.f32.partialorder %v165_v22, 0.0  ;;  %v171_v24 = vmul.f32 %v169_v17, %v165_v22 }
  0xfa   :  { %174 = vst [vmem:[#allocation3] sm:$0xff] %v172_v23 }
  0xfb   :  { %v173_v25 = vsel %vm168_vm4, %v165_v22, %v171_v24 }
  0xfc   :  { %175 = vst [vmem:[#allocation3 + $0x8] sm:$0xff] %v173_v25 }
  0xfd   :  { %259 = shalt.err (!%p256_p4)
}
  0xfe   :  { %s260_s14 = scalar_lea.hbm %s354_s4, 256 }
  0xff   :  { %p261_p5 = scmp.ne.s32.totalorder %s354_s4, %s260_s14  ;;  %p264_p6 = scmp.lt.u32.totalorder %s260_s14, %s354_s4 }
 0x101   :  { %p266_p7 = pnand %p264_p6, %p261_p5 }
 0x103   :  { %269 = shalt.err (!%p266_p7)
}
 0x104   :  { %s275_s19 = smov 128   ;;  %s276_s20 = smov 8  }
 0x105   :  { %187 = dma.vmem_to_hbm [thread:$0]  %s182_s12, 256, %s354_s4, [#allocation4], %s275_s19, %s275_s19, %s276_s20  }
 0x106   :  { %270 = dma.done.wait [#allocation4], 256  }
 0x107   :  { %271 = vsyncadd [#allocation4], 4294967040 }
 0x108   :  { %191 = vsyncpa [#allocation4], 1 }

</bundles_post_ra>
